<compile_context>
chip_gen: v6e
topology: v6e:2x2x1
jax: 0.10.0
libtpu: 0.0.40
codegen_flags: <defaults>
</compile_context>

<pallas_src>
import functools

import jax
import jax.numpy as jnp
import numpy as np
from jax import lax
from jax.experimental import pallas as pl
from jax.experimental.pallas import tpu as pltpu

_EPS = 1e-5
_NEG_SLOPE = 0.2


def _round_up(x, m):
    return ((x + m - 1) // m) * m


@functools.lru_cache(maxsize=None)
def _vmem_limit_bytes():
    # Generation-aware scoped-VMEM budget: ~75% of physical VMEM, capped at
    # 96 MiB (v5e/v6e: 128 MiB physical -> 96 MiB; v7x: 64 MiB -> 48 MiB).
    try:
        cap = int(pltpu.get_tpu_info().vmem_capacity_bytes)
        return int(min(0.75 * cap, 96 * 1024 * 1024))
    except Exception:
        return 32 * 1024 * 1024


# --------------------------------------------------------------------------
# Fused conv (+ InstanceNorm + LeakyReLU) kernel: shift-and-matmul over taps.
# --------------------------------------------------------------------------

def _make_fused_kernel(nphase, ka, kb, Wh, Lacc, inv_count, apply_norm_act):
    """Kernel over one (batch, cout-tile) block.

    x_ref: (1, nphase, S_pad, Cin)  bf16  phase-decomposed, spatially flattened
    w_ref: (ntap, Cin, tC)          bf16  per-tap weight matrices
    b_ref: (1, tC)                  f32   bias
    m_ref: (Lacc, 1)                f32   precomputed row-validity mask
    o_ref: (1, Lacc, tC)                  Lacc = H_out * Wh (garbage columns
                                          per row are sliced in the wrapper)
    """

    def kernel(x_ref, w_ref, b_ref, m_ref, o_ref):
        tC = o_ref.shape[-1]
        acc = jnp.zeros((Lacc, tC), jnp.float32)
        t = 0
        for ph in range(nphase):
            for dy in range(ka):
                for dx in range(kb):
                    off = dy * Wh + dx
                    xs = x_ref[0, ph, pl.ds(off, Lacc), :]       # (Lacc, Cin) bf16
                    acc = acc + jnp.dot(xs, w_ref[t],
                                        preferred_element_type=jnp.float32)
                    t += 1
        acc = acc + b_ref[...]                                    # bias (f32)
        if apply_norm_act:
            # Mask the (Wh - W_out) garbage columns out of the statistics,
            # then one-pass InstanceNorm (biased var) + LeakyReLU(0.2).
            mask = m_ref[...]                                     # (Lacc, 1)
            xm = acc * mask
            mean = jnp.sum(xm, axis=0, keepdims=True) * inv_count
            ex2 = jnp.sum(xm * acc, axis=0, keepdims=True) * inv_count
            var = jnp.maximum(ex2 - mean * mean, 0.0)
            y = (acc - mean) * lax.rsqrt(var + _EPS)
            y = jnp.where(y > 0, y, _NEG_SLOPE * y)
        else:
            y = acc
        o_ref[0] = y.astype(o_ref.dtype)

    return kernel


def _phase_decompose(x_nhwc, stride, ksize=4, padding=1):
    """Zero-pad and (stride 2) phase-split the input; flatten spatial dims.

    Returns (N, nphase, S_pad, C) plus metadata so the kernel's contiguous
    shifted slices reproduce the conv taps exactly.  The flattened row width
    Wh is padded to a multiple of 8 for sublane-aligned tap offsets.
    """
    N, H, W, C = x_nhwc.shape
    xp = jnp.pad(x_nhwc, ((0, 0), (padding, padding), (padding, padding), (0, 0)))
    Hp, Wp = H + 2 * padding, W + 2 * padding
    H_out = (Hp - ksize) // stride + 1
    W_out = (Wp - ksize) // stride + 1
    if stride == 1:
        nphase, ka, kb = 1, ksize, ksize
        Hh, Wh = Hp, Wp
        phases = xp.reshape(N, 1, Hh, Wh, C)
    elif stride == 2:
        Hp2, Wp2 = Hp + (Hp % 2), Wp + (Wp % 2)      # even for exact phase split
        xp = jnp.pad(xp, ((0, 0), (0, Hp2 - Hp), (0, Wp2 - Wp), (0, 0)))
        nphase, ka, kb = 4, ksize // 2, ksize // 2
        Hh, Wh = Hp2 // 2, Wp2 // 2
        phases = xp.reshape(N, Hh, 2, Wh, 2, C)
        phases = jnp.transpose(phases, (0, 2, 4, 1, 3, 5)).reshape(N, 4, Hh, Wh, C)
    else:
        raise NotImplementedError(f"stride {stride}")

    # Pad row width so dy*Wh tap offsets are sublane-aligned and Lacc % 8 == 0.
    Wh_pad = _round_up(Wh, 8)
    if Wh_pad > Wh:
        phases = jnp.pad(phases, ((0, 0), (0, 0), (0, 0), (0, Wh_pad - Wh), (0, 0)))

    Lacc = H_out * Wh_pad
    max_off = (ka - 1) * Wh_pad + (kb - 1)
    S = Hh * Wh_pad
    S_pad = max(S, max_off + Lacc)                   # tail zeros keep taps in-bounds
    flat = phases.reshape(N, nphase, S, C)
    if S_pad > S:
        flat = jnp.pad(flat, ((0, 0), (0, 0), (0, S_pad - S), (0, 0)))
    meta = dict(nphase=nphase, ka=ka, kb=kb, Wh=Wh_pad,
                H_out=H_out, W_out=W_out, Lacc=Lacc)
    return flat, meta


def _weights_to_taps(w_oihw, stride, cout_pad):
    """(Cout, Cin, 4, 4) -> (ntap, Cin, cout_pad) in the kernel's tap order."""
    Cout, Cin, KH, KW = w_oihw.shape
    w_kkio = jnp.transpose(w_oihw, (2, 3, 1, 0))      # (KH, KW, Cin, Cout)
    taps = []
    if stride == 1:
        for dy in range(KH):
            for dx in range(KW):
                taps.append(w_kkio[dy, dx])
    else:  # stride 2: phase (r, s), intra-phase offsets (dy, dx)
        for r in range(2):
            for s in range(2):
                for dy in range(KH // 2):
                    for dx in range(KW // 2):
                        taps.append(w_kkio[2 * dy + r, 2 * dx + s])
    wt = jnp.stack(taps, axis=0)                      # (ntap, Cin, Cout)
    if cout_pad > Cout:
        wt = jnp.pad(wt, ((0, 0), (0, 0), (0, cout_pad - Cout)))
    return wt


def conv_block_fused(x_nhwc, w_oihw, bias, stride, apply_norm_act, out_dtype):
    N, H, W, Cin_x = x_nhwc.shape
    Cout, Cin_w = w_oihw.shape[0], w_oihw.shape[1]
    if Cin_x > Cin_w:
        # Previous layer padded its channels (e.g. layer-1's 64->128): give the
        # weight matching zero Cin rows so the matmul K stays lane-aligned.
        w_oihw = jnp.pad(w_oihw, ((0, 0), (0, Cin_x - Cin_w), (0, 0), (0, 0)))
    Cin = Cin_x

    flat, m = _phase_decompose(x_nhwc, stride)
    nphase, ka, kb = m["nphase"], m["ka"], m["kb"]
    Wh, H_out, W_out, Lacc = m["Wh"], m["H_out"], m["W_out"], m["Lacc"]
    ntap = nphase * ka * kb
    S_pad = flat.shape[2]

    # Lane-dense channel tiling.  tC=256 fills the 256-wide MXU (v6e/v7x) on
    # the FLOP-dominant Cout>=256 layers; 128 elsewhere (incl. padded Cout=1).
    cout_pad = max(128, _round_up(Cout, 128))
    tC = 256 if cout_pad % 256 == 0 else 128
    n_ct = cout_pad // tC

    wt = _weights_to_taps(w_oihw, stride, cout_pad).astype(jnp.bfloat16)
    b_pad = jnp.zeros((1, cout_pad), jnp.float32).at[0, :Cout].set(
        bias.astype(jnp.float32))

    # Precomputed validity mask for the (Wh - W_out) garbage columns per
    # flattened output row (used only by the InstanceNorm statistics).
    col = np.arange(Lacc, dtype=np.int64) % Wh
    mask = jnp.asarray((col < W_out).astype(np.float32)).reshape(Lacc, 1)

    inv_count = 1.0 / float(H_out * W_out)
    kernel = _make_fused_kernel(nphase, ka, kb, Wh, Lacc, inv_count,
                                apply_norm_act)
    out = pl.pallas_call(
        kernel,
        out_shape=jax.ShapeDtypeStruct((N, Lacc, cout_pad), out_dtype),
        grid_spec=pltpu.PrefetchScalarGridSpec(
            num_scalar_prefetch=0,
            grid=(N, n_ct),
            in_specs=[
                pl.BlockSpec((1, nphase, S_pad, Cin), lambda n, c: (n, 0, 0, 0)),
                pl.BlockSpec((ntap, Cin, tC), lambda n, c: (0, 0, c)),
                pl.BlockSpec((1, tC), lambda n, c: (0, c)),
                pl.BlockSpec((Lacc, 1), lambda n, c: (0, 0)),
            ],
            out_specs=pl.BlockSpec((1, Lacc, tC), lambda n, c: (n, 0, c)),
        ),
        compiler_params=pltpu.CompilerParams(
            dimension_semantics=("parallel", "parallel"),
            vmem_limit_bytes=_vmem_limit_bytes(),
        ),
    )(flat.astype(jnp.bfloat16), wt, b_pad, mask)

    # Slice off garbage columns / padded channels right next to the call.
    out = out.reshape(N, H_out, Wh, cout_pad)[:, :, :W_out, :Cout]
    return out


# --------------------------------------------------------------------------
# im2col path (layer 1 only: Cin=3 is too thin for per-tap matmuls).
# --------------------------------------------------------------------------

def _make_im2col_kernel(apply_norm_act, P):
    inv_p = 1.0 / float(P)

    def kernel(p_ref, w_ref, b_ref, o_ref):
        x = jnp.dot(p_ref[0], w_ref[...], preferred_element_type=jnp.float32)
        x = x + b_ref[...]
        if apply_norm_act:
            mean = jnp.sum(x, axis=0, keepdims=True) * inv_p
            ex2 = jnp.sum(x * x, axis=0, keepdims=True) * inv_p
            var = jnp.maximum(ex2 - mean * mean, 0.0)
            x = (x - mean) * lax.rsqrt(var + _EPS)
            x = jnp.where(x > 0, x, _NEG_SLOPE * x)
        o_ref[0] = x.astype(o_ref.dtype)

    return kernel


def _im2col(x_nhwc, ksize, stride, padding):
    N, H, W, C = x_nhwc.shape
    xp = jnp.pad(x_nhwc, ((0, 0), (padding, padding), (padding, padding), (0, 0)))
    Hp, Wp = H + 2 * padding, W + 2 * padding
    H_out = (Hp - ksize) // stride + 1
    W_out = (Wp - ksize) // stride + 1
    cols = []
    for ky in range(ksize):
        for kx in range(ksize):
            cols.append(
                xp[:, ky:ky + stride * H_out:stride, kx:kx + stride * W_out:stride, :])
    patches = jnp.stack(cols, axis=3)                 # (N, Ho, Wo, K*K, C)
    patches = patches.reshape(N, H_out * W_out, ksize * ksize * C)
    return patches, H_out, W_out


def conv_block_im2col(x_nhwc, w_oihw, bias, stride, apply_norm_act, out_dtype):
    Cout, Cin, KH, KW = w_oihw.shape
    patches, H_out, W_out = _im2col(x_nhwc, KH, stride, 1)
    N, P, K = patches.shape

    # Pad Cout to a lane-dense 128 (zero weight/bias columns).  The padded
    # channels stay exactly zero through InstanceNorm/LeakyReLU and are
    # consumed by the next layer's matching zero Cin rows, so they are kept
    # (lane-dense stores here, K=128 contraction in layer 2).
    cout_pad = max(128, _round_up(Cout, 128))
    w_mat = jnp.transpose(w_oihw, (2, 3, 1, 0)).reshape(K, Cout)
    w_mat = jnp.pad(w_mat, ((0, 0), (0, cout_pad - Cout))).astype(jnp.bfloat16)
    b_mat = jnp.zeros((1, cout_pad), jnp.float32).at[0, :Cout].set(
        bias.astype(jnp.float32))

    kernel = _make_im2col_kernel(apply_norm_act, P)
    out = pl.pallas_call(
        kernel,
        out_shape=jax.ShapeDtypeStruct((N, P, cout_pad), out_dtype),
        grid_spec=pltpu.PrefetchScalarGridSpec(
            num_scalar_prefetch=0,
            grid=(N,),
            in_specs=[
                pl.BlockSpec((1, P, K), lambda n: (n, 0, 0)),
                pl.BlockSpec((K, cout_pad), lambda n: (0, 0)),
                pl.BlockSpec((1, cout_pad), lambda n: (0, 0)),
            ],
            out_specs=pl.BlockSpec((1, P, cout_pad), lambda n: (n, 0, 0)),
        ),
        compiler_params=pltpu.CompilerParams(
            dimension_semantics=("parallel",),
            vmem_limit_bytes=_vmem_limit_bytes(),
        ),
    )(patches.astype(jnp.bfloat16), w_mat, b_mat)
    return out.reshape(N, H_out, W_out, cout_pad)


# --------------------------------------------------------------------------
# Model: parameters + forward.
# --------------------------------------------------------------------------

_LAYER_SPECS = lambda cin: [  # (in_ch, out_ch, stride), kernel=4, padding=1
    (cin, 64, 2), (64, 128, 2), (128, 256, 2), (256, 512, 1), (512, 1, 1),
]


def init_params(key, in_channels):
    params = []
    for (ci, co, stride) in _LAYER_SPECS(in_channels):
        key, wk, bk = jax.random.split(key, 3)
        fan_in = ci * 4 * 4
        w = jax.random.normal(wk, (co, ci, 4, 4), jnp.float32) / jnp.sqrt(fan_in)
        b = jax.random.normal(bk, (co,), jnp.float32) * 0.01
        params.append((w, b, stride))
    return params


def discriminator_forward(x_nchw, params):
    x = jnp.transpose(x_nchw, (0, 2, 3, 1))            # NCHW -> NHWC
    n_layers = len(params)
    for i, (w, b, stride) in enumerate(params):
        is_last = i == n_layers - 1                     # Conv2d(512,1): no norm/act
        apply_norm_act = not is_last
        out_dtype = jnp.float32 if is_last else jnp.bfloat16
        if i == 0:
            x = conv_block_im2col(x, w, b, stride, apply_norm_act, out_dtype)
        else:
            x = conv_block_fused(x, w, b, stride, apply_norm_act, out_dtype)
    return jnp.transpose(x, (0, 3, 1, 2))               # NHWC -> NCHW


# --------------------------------------------------------------------------
# Pure-JAX reference (matches the kernel's bf16 operand / f32 math policy).
# --------------------------------------------------------------------------

def reference_forward(x_nchw, params):
    x = x_nchw
    n_layers = len(params)
    for i, (w, b, stride) in enumerate(params):
        xq = x.astype(jnp.bfloat16).astype(jnp.float32)
        wq = w.astype(jnp.bfloat16).astype(jnp.float32)
        y = lax.conv_general_dilated(
            xq, wq, window_strides=(stride, stride), padding=((1, 1), (1, 1)),
            dimension_numbers=("NCHW", "OIHW", "NCHW"),
            precision=lax.Precision.HIGHEST)
        y = y + b.reshape(1, -1, 1, 1)
        if i < n_layers - 1:
            mean = jnp.mean(y, axis=(2, 3), keepdims=True)
            var = jnp.mean(jnp.square(y - mean), axis=(2, 3), keepdims=True)
            y = (y - mean) * lax.rsqrt(var + 1e-5)
            y = jnp.where(y > 0, y, 0.2 * y)
        x = y
    return x


if __name__ == "__main__":
    key = jax.random.PRNGKey(0)
    key, xk, pk = jax.random.split(key, 3)

    in_channels = 3
    # 32x32 is the smallest spatial size that keeps every layer's output
    # non-degenerate (final PatchGAN map is 2x2).
    x = jax.random.normal(xk, (2, in_channels, 32, 32), jnp.float32)   # NCHW
    params = init_params(pk, in_channels)

    out = jax.block_until_ready(discriminator_forward(x, params))
    ref = jax.block_until_ready(reference_forward(x, params))

    assert out.shape == ref.shape, (out.shape, ref.shape)
    np.testing.assert_allclose(np.asarray(out, dtype=np.float32), np.asarray(ref),
                               rtol=1e-2, atol=1e-2)
    print("KERNEL_OK")
</pallas_src>

<mosaic_0001>
module attributes {stable_mosaic.version = 11 : i64} {
  func.func @kernel(%arg0: i32, %arg1: memref<1x256x48xbf16, #tpu.memory_space<vmem>>, %arg2: memref<48x128xbf16, #tpu.memory_space<vmem>>, %arg3: memref<1x128xf32, #tpu.memory_space<vmem>>, %arg4: memref<1x256x128xbf16, #tpu.memory_space<vmem>>) attributes {dimension_semantics = [#tpu.dimension_semantics<parallel>], iteration_bounds = array<i64: 2>, scalar_prefetch = 0 : i64, scratch_operands = 0 : i64, tpu.core_type = #tpu.core_type<tc>, window_params = [{transform_indices = @transform_0, window_bounds = array<i64: 1, 256, 48>}, {pipeline_mode = #tpu.pipeline_mode<synchronous>, transform_indices = @transform_1, window_bounds = array<i64: 48, 128>}, {pipeline_mode = #tpu.pipeline_mode<synchronous>, transform_indices = @transform_2, window_bounds = array<i64: 1, 128>}, {transform_indices = @transform_3, window_bounds = array<i64: 1, 256, 128>}]} {
    %c0 = arith.constant 0 : index
    %c0_0 = arith.constant 0 : index
    %c0_1 = arith.constant 0 : index
    %0 = vector.load %arg1[%c0, %c0_0, %c0_1] : memref<1x256x48xbf16, #tpu.memory_space<vmem>>, vector<1x256x48xbf16>
    %1 = vector.shape_cast %0 : vector<1x256x48xbf16> to vector<256x48xbf16>
    %c0_2 = arith.constant 0 : index
    %c0_3 = arith.constant 0 : index
    %2 = vector.load %arg2[%c0_2, %c0_3] : memref<48x128xbf16, #tpu.memory_space<vmem>>, vector<48x128xbf16>
    %cst = arith.constant dense<0.000000e+00> : vector<256x128xf32>
    %3 = tpu.matmul %1, %2, %cst {dimension_numbers = #tpu.dot_dimension_numbers<[1], [0], [0], [1], [0, 0, 1, 1], [], []>} : vector<256x48xbf16>, vector<48x128xbf16>, vector<256x128xf32> -> vector<256x128xf32>
    %c0_4 = arith.constant 0 : index
    %c0_5 = arith.constant 0 : index
    %4 = vector.load %arg3[%c0_4, %c0_5] : memref<1x128xf32, #tpu.memory_space<vmem>>, vector<1x128xf32>
    %5 = vector.broadcast %4 : vector<1x128xf32> to vector<256x128xf32>
    %6 = arith.addf %3, %5 : vector<256x128xf32>
    %cst_6 = arith.constant dense<0.000000e+00> : vector<128xf32>
    %7 = vector.multi_reduction <add>, %6, %cst_6 [0] : vector<256x128xf32> to vector<128xf32>
    %8 = vector.shape_cast %7 : vector<128xf32> to vector<1x128xf32>
    %cst_7 = arith.constant 3.906250e-03 : f32
    %9 = vector.broadcast %cst_7 : f32 to vector<1x128xf32>
    %10 = arith.mulf %8, %9 : vector<1x128xf32>
    %11 = arith.mulf %6, %6 : vector<256x128xf32>
    %cst_8 = arith.constant dense<0.000000e+00> : vector<128xf32>
    %12 = vector.multi_reduction <add>, %11, %cst_8 [0] : vector<256x128xf32> to vector<128xf32>
    %13 = vector.shape_cast %12 : vector<128xf32> to vector<1x128xf32>
    %cst_9 = arith.constant 3.906250e-03 : f32
    %14 = vector.broadcast %cst_9 : f32 to vector<1x128xf32>
    %15 = arith.mulf %13, %14 : vector<1x128xf32>
    %16 = arith.mulf %10, %10 : vector<1x128xf32>
    %17 = arith.subf %15, %16 : vector<1x128xf32>
    %cst_10 = arith.constant 0.000000e+00 : f32
    %18 = vector.broadcast %cst_10 : f32 to vector<1x128xf32>
    %19 = arith.maximumf %17, %18 : vector<1x128xf32>
    %20 = vector.broadcast %10 : vector<1x128xf32> to vector<256x128xf32>
    %21 = arith.subf %6, %20 : vector<256x128xf32>
    %cst_11 = arith.constant 9.99999974E-6 : f32
    %22 = vector.broadcast %cst_11 : f32 to vector<1x128xf32>
    %23 = arith.addf %19, %22 : vector<1x128xf32>
    %24 = math.rsqrt %23 : vector<1x128xf32>
    %25 = vector.broadcast %24 : vector<1x128xf32> to vector<256x128xf32>
    %26 = arith.mulf %21, %25 : vector<256x128xf32>
    %cst_12 = arith.constant 0.000000e+00 : f32
    %27 = vector.broadcast %cst_12 : f32 to vector<256x128xf32>
    %28 = arith.cmpf ogt, %26, %27 : vector<256x128xf32>
    %cst_13 = arith.constant 2.000000e-01 : f32
    %29 = vector.broadcast %cst_13 : f32 to vector<256x128xf32>
    %30 = arith.mulf %29, %26 : vector<256x128xf32>
    %31 = arith.select %28, %26, %30 : vector<256x128xi1>, vector<256x128xf32>
    %32 = arith.truncf %31 : vector<256x128xf32> to vector<256x128xbf16>
    %c0_14 = arith.constant 0 : index
    %c0_15 = arith.constant 0 : index
    %c0_16 = arith.constant 0 : index
    %33 = vector.load %arg4[%c0_14, %c0_15, %c0_16] : memref<1x256x128xbf16, #tpu.memory_space<vmem>>, vector<1x256x128xbf16>
    %34 = vector.shape_cast %33 : vector<1x256x128xbf16> to vector<256x128xbf16>
    %35 = vector.shape_cast %32 : vector<256x128xbf16> to vector<1x256x128xbf16>
    tpu.vector_store %arg4[%c0_14, %c0_15, %c0_16], %35 {strides = array<i32>} : memref<1x256x128xbf16, #tpu.memory_space<vmem>>, vector<1x256x128xbf16>,
    return
  }
  func.func @transform_0(%arg0: i32) -> (i32, i32, i32) {
    %c0_i32 = arith.constant 0 : i32
    %c0_i32_0 = arith.constant 0 : i32
    %c0_i32_1 = arith.constant 0 : i32
    return %arg0, %c0_i32, %c0_i32_0 : i32, i32, i32
  }
  func.func @transform_1(%arg0: i32) -> (i32, i32) {
    %c0_i32 = arith.constant 0 : i32
    %c0_i32_0 = arith.constant 0 : i32
    %c0_i32_1 = arith.constant 0 : i32
    return %c0_i32, %c0_i32_0 : i32, i32
  }
  func.func @transform_2(%arg0: i32) -> (i32, i32) {
    %c0_i32 = arith.constant 0 : i32
    %c0_i32_0 = arith.constant 0 : i32
    %c0_i32_1 = arith.constant 0 : i32
    return %c0_i32, %c0_i32_0 : i32, i32
  }
  func.func @transform_3(%arg0: i32) -> (i32, i32, i32) {
    %c0_i32 = arith.constant 0 : i32
    %c0_i32_0 = arith.constant 0 : i32
    %c0_i32_1 = arith.constant 0 : i32
    return %arg0, %c0_i32, %c0_i32_0 : i32, i32, i32
  }
}

</mosaic_0001>

<bundles_post_ra>
// kernel: tpu_custom_call.1
= control target key start
LH: loop header
LB: loop body
LE: loop exit
PB: predicated region body
PF: predicated region fallthrough
CT: control target
= control target key end

     0   :  { %8 = vsyncpa [#allocation3], 0  ;;  %s2140_s0 = inlined_call_operand.vmem [shape: bf16[2,256,48], index: 0, kind: input, shape index: {}]   ;;  %s2141_s1 = inlined_call_operand.vmem [shape: bf16[48,128], index: 1, kind: input, shape index: {}]   ;;  %s2142_s2 = inlined_call_operand.vmem [shape: f32[1,128], index: 2, kind: input, shape index: {}]   ;;  %s2143_s3 = inlined_call_operand.hbm [shape: bf16[2,256,128], index: 3, kind: output, shape index: {}]  }
   0x1   :  { %10 = vsyncpa [#allocation3 + $0x1], 0  ;;  %s1451_s12 = smov 0   ;;  %s1453_s13 = smov 0  }
   0x2   :  { %s1455_s14 = smov 0   ;;  %s1457_s15 = smov 0  }
   0x3 LB: > { %s1472_s16 = sadd.s32 4294967295, %s1426_s15   ;;  %s1032_s17 = sadd.s32 4294967294, %s1426_s15   ;;  %s1426_s15 = sphi %s1457_s15, %s2162_s15   ;;  %s1422_s14 = sphi %s1455_s14, %s2161_s14   ;;  %s1418_s13 = sphi %s1453_s13, %s2160_s13   ;;  %s1414_s12 = sphi %s1451_s12, %s2159_s12  }
   0x4   : > { %s1476_s18 = sadd.s32 1, %s1426_s15   ;;  %s91_s19 = sadd.s32 1, %s1422_s14 }
   0x5   : > { %s88_s20 = ssub.s32 %s1426_s15, %s1476_s18  ;;  %p101_p0 = scmp.ne.s32.totalorder %s1422_s14, %s1418_s13 }
   0x6   : > { %p89_p1 = scmp.eq.s32.totalorder %s88_s20, 0  ;;  %p102_p2 = scmp.eq.s32.totalorder %s1472_s16, 1 }
   0x7   : > { %p107_p3 = scmp.ne.s32.totalorder %s1418_s13, %s1414_s12  ;;  %p108_p4 = scmp.eq.s32.totalorder %s1032_s17, 1 }
   0x8   : > { %s1487_s21 = scalar_select %p89_p1, %s1422_s14, %s91_s19  }
   0x9   : > { %p1489_p5 = por %p102_p2, %p101_p0  ;;  %p1493_p6 = por %p108_p4, %p107_p3 }
   0xa   : > { %p1035_p7 = scmp.ge.s32.totalorder %s1426_s15, 1  ;;  %p140_p8 = scmp.lt.s32.totalorder %s1426_s15, 3 }
   0xc   : > { %p141_p9 = pnand %p1035_p7, %p140_p8 }
   0xd   : > { %p164_p10 = scmp.lt.s32.totalorder (!%p141_p9), %s1472_s16, 1  ;;  %s161_s10 = sand.u32 (!%p141_p9), 1, %s1418_s13  }
   0xe   : > { %144 = sbr.rel (%p141_p9) target bundleno = 386 (0x182), region = 32  ;;  %s1036_s11 = sshll.u32 (!%p141_p9), %s161_s10, 7 }
   0xf   : > { %s1831_s17 = scalar_lea.vmem (!%p141_p9), [#allocation2], %s1036_s11  ;;  %s1145_s19 = sshll.u32 (!%p141_p9), %s1472_s16, 11 }
  0x10   : > { %s970_s20 = sshll.u32 (!%p141_p9), %s1831_s17, 4  ;;  %s2084_s25 = scalar_lea.hbm (!%p141_p9), %s2143_s3, %s1145_s19  ;;  %s2086_s20 = int_to_ptr.vmem [resolvable:$true] %s970_s20 }
  0x11   : > { %s2100_s26 = scalar_lea.sflag (!%p141_p9), [#allocation3], %s161_s10  ;;  %s1366_s27 = scalar_lea.vmem (!%p141_p9), %s2086_s20, 2048 }
  0x12   : > { %p1367_p11 = scmp.ne.s32.totalorder (!%p141_p9), %s2086_s20, %s1366_s27 }
  0x13   : > { %v1345_v0 = vld [vmem:[%s2141_s1 + $0x10] sm:$0xff]   ;;  %v1346_v1 = vld [vmem:[%s2141_s1 + $0x8] sm:$0xff]   ;;  %s165_s28 = scalar_select %p164_p10, %s1472_s16, 1  ;;  %v1347_v2 = vld [vmem:[%s2141_s1] sm:$0xff]   ;;  %vm313_vm0 = vcmask 392192  }
  0x14   : > { %1260 = vmatprep.subr.bf16.mxu0 %v1345_v0  ;;  %1298 = vmatprep.subr.bf16.mxu1 %v1345_v0  ;;  %v1552_v22 = vld [vmem:[%s2142_s2] ss:$0 sm:$0xff]  ;;  %p1368_p12 = pnand %p1367_p11, %p1489_p5 }
  0x15   : > { %1261 = vmatpush3.bf16.msra.mxu0 %v1345_v0  ;;  %1301 = vmatpush3.bf16.msra.mxu1 %v1345_v0  ;;  %s1112_s4 = sshll.u32 %s165_s28, 7  ;;  %s1428_s28 = smov [#allocation2]  }
  0x16   : > { %1262 = vmatprep.subr.bf16.mxu0 %v1346_v1  ;;  %1299 = vmatprep.subr.bf16.mxu1 %v1346_v1  ;;  %s1513_s7 = scalar_lea.vmem %s2140_s0, %s1112_s4  ;;  %p1369_p13 = pneg %p1368_p12 }
  0x17   : > { %v1348_v3 = vld [vmem:[%s1513_s7] sm:$0xff]   ;;  %v1349_v4 = vld [vmem:[%s1513_s7 + $0x8] sm:$0xff]   ;;  %v1350_v5 = vld [vmem:[%s1513_s7 + $0x10] sm:$0xff]   ;;  %s1370_s29 = sshll.u32 %s1428_s28, 4  ;;  %s1371_s29 = int_to_ptr.vmem [resolvable:$false] %s1370_s29 }
  0x18   : > { %1266 = vmatprep.mubr.msk.bf16.mxu0 %vm313_vm0, %v1348_v3  ;;  %v1356_v6 = vld [vmem:[%s1513_s7 + $0x40] sm:$0xff]   ;;  %v1357_v7 = vld [vmem:[%s1513_s7 + $0x48] sm:$0xff]   ;;  %v1358_v8 = vld [vmem:[%s1513_s7 + $0x50] sm:$0xff]   ;;  %s1372_s30 = scalar_lea.vmem %s1371_s29, 4096  ;;  %p1373_p0 = scmp.lt.s32.totalorder %s2086_s20, %s1371_s29 }
  0x19   : > { %1263 = vmatpush3.bf16.msra.mxu0 %v1346_v1  ;;  %1302 = vmatpush3.bf16.msra.mxu1 %v1346_v1  ;;  %v1351_v9 = vld [vmem:[%s1513_s7 + $0x18] sm:$0xff]   ;;  %v1352_v10 = vld [vmem:[%s1513_s7 + $0x20] sm:$0xff]   ;;  %v1353_v13 = vld [vmem:[%s1513_s7 + $0x28] sm:$0xff]   ;;  %p1374_p1 = scmp.lt.s32.totalorder %s1372_s30, %s1366_s27 }
  0x1a   : > { %1264 = vmatprep.subr.bf16.mxu0 %v1347_v2  ;;  %1300 = vmatprep.subr.bf16.mxu1 %v1347_v2  ;;  %v1359_v11 = vld [vmem:[%s1513_s7 + $0x58] sm:$0xff]   ;;  %v1360_v12 = vld [vmem:[%s1513_s7 + $0x60] sm:$0xff]   ;;  %v1354_v14 = vld [vmem:[%s1513_s7 + $0x30] sm:$0xff]  }
  0x1b   : > { %1282 = vmatprep.mubr.msk.bf16.mxu1 %vm313_vm0, %v1356_v6  ;;  %v1361_v15 = vld [vmem:[%s1513_s7 + $0x68] sm:$0xff]   ;;  %v1362_v16 = vld [vmem:[%s1513_s7 + $0x70] sm:$0xff]   ;;  %v1355_v17 = vld [vmem:[%s1513_s7 + $0x38] sm:$0xff]   ;;  %p1375_p2 = por %p1374_p1, %p1373_p0 }
  0x1c   : > { %v1363_v18 = vld [vmem:[%s1513_s7 + $0x78] sm:$0xff]  }
  0x1d   : > { %1265 = vmatpush3.bf16.msra.mxu0 %v1347_v2  ;;  %1303 = vmatpush3.bf16.msra.mxu1 %v1347_v2  ;;  %p1376_p3 = pnand %p1375_p2, %p1369_p13 }
  0x20   : > { %1267 = vmatmul.mubr.msk.bf16.vlgmr.msra.gmra.mxu0 %vm313_vm0, %v1349_v4  ;;  %1283 = vmatmul.mubr.msk.bf16.vlgmr.msra.gmra.mxu1 %vm313_vm0, %v1357_v7 }
  0x21   : > { %1270 = vmatprep.mubr.msk.bf16.mxu0 %vm313_vm0, %v1350_v5  ;;  %1286 = vmatprep.mubr.msk.bf16.mxu1 %vm313_vm0, %v1358_v8 }
  0x28   : > { %1271 = vmatmul.mubr.msk.bf16.gmra.mxu0 %vm313_vm0, %v1351_v9  ;;  %1287 = vmatmul.mubr.msk.bf16.gmra.mxu1 %vm313_vm0, %v1359_v11 }
  0x29   : > { %1274 = vmatprep.mubr.msk.bf16.mxu0 %vm313_vm0, %v1352_v10  ;;  %1290 = vmatprep.mubr.msk.bf16.mxu1 %vm313_vm0, %v1360_v12 }
  0x30   : > { %1275 = vmatmul.mubr.msk.bf16.gmra.mxu0 %vm313_vm0, %v1353_v13  ;;  %1291 = vmatmul.mubr.msk.bf16.gmra.mxu1 %vm313_vm0, %v1361_v15 }
  0x31   : > { %1278 = vmatprep.mubr.msk.bf16.mxu0 %vm313_vm0, %v1354_v14  ;;  %1294 = vmatprep.mubr.msk.bf16.mxu1 %vm313_vm0, %v1362_v16 }
  0x38   : > { %1279 = vmatmul.mubr.msk.bf16.gmra.mxu0 %vm313_vm0, %v1355_v17  ;;  %1295 = vmatmul.mubr.msk.bf16.gmra.mxu1 %vm313_vm0, %v1363_v18 }
  0xe0   : > { %v1268_v19 = vpop.f32.mrf.mxu0  ;;  %v1547_v21 = vpop.f32.mrf.mxu1 }
  0xe1   : > { %v1560_v27 = vadd.f32 %v1268_v19, %v1552_v22 }
  0xe2   : > { %v396_v20 = vpop.f32.mrf.mxu0  ;;  %v1557_v25 = vpop.f32.mrf.mxu1 }
  0xe3   : > { %v1555_v24 = vadd.f32 %v1552_v22, %v396_v20  ;;  %v563_v37 = vmul.f32 %v1560_v27, %v1560_v27 }
  0xe4   : > { %v1269_v23 = vpop.f32.mrf.mxu0  ;;  %v1565_v29 = vpop.f32.mrf.mxu1 }
  0xe5   : > { %v561_v31 = vmul.f32 %v1555_v24, %v1555_v24  ;;  %v1570_v32 = vadd.f32 %v1269_v23, %v1552_v22 }
  0xe6   : > { %v399_v26 = vpop.f32.mrf.mxu0  ;;  %v1576_v36 = vpop.f32.mrf.mxu1 }
  0xe7   : > { %v1563_v28 = vadd.f32 %v1552_v22, %v399_v26  ;;  %v564_v42 = vmul.f32 %v1570_v32, %v1570_v32 }
  0xe8   : > { %v1272_v30 = vpop.f32.mrf.mxu0  ;;  %v1590_v47 = vpop.f32.mrf.mxu1 }
  0xe9   : > { %v523_v33 = vadd.f32 %v1563_v28, %v1555_v24  ;;  %v562_v34 = vmul.f32 %v1563_v28, %v1563_v28  ;;  %v1588_v45 = vadd.f32 %v1272_v30, %v1552_v22 }
  0xea   : > { %v412_v35 = vpop.f32.mrf.mxu0  ;;  %v1604_v58 = vpop.f32.mrf.mxu1 }
  0xeb   : > { %v524_v38 = vadd.f32 %v523_v33, %v1560_v27  ;;  %v593_v39 = vadd.f32 %v562_v34, %v561_v31  ;;  %v1582_v40 = vadd.f32 %v1552_v22, %v412_v35  ;;  %v567_v59 = vmul.f32 %v1588_v45, %v1588_v45 }
  0xec   : > { %v1273_v41 = vpop.f32.mrf.mxu0  ;;  %v1618_v5 = vpop.f32.mrf.mxu1 }
  0xed   : > { %v594_v43 = vadd.f32 %v593_v39, %v563_v37  ;;  %v525_v44 = vadd.f32 %v524_v38, %v1570_v32  ;;  %v565_v49 = vmul.f32 %v1582_v40, %v1582_v40  ;;  %v1599_v54 = vadd.f32 %v1273_v41, %v1552_v22 }
  0xee   : > { %v415_v46 = vpop.f32.mrf.mxu0  ;;  %v479_v16 = vpop.f32.mrf.mxu1 }
  0xef   : > { %v526_v48 = vadd.f32 %v525_v44, %v1582_v40  ;;  %v595_v50 = vadd.f32 %v594_v43, %v564_v42  ;;  %v1596_v51 = vadd.f32 %v1552_v22, %v415_v46  ;;  %v568_v0 = vmul.f32 %v1599_v54, %v1599_v54 }
  0xf0   : > { %v1276_v52 = vpop.f32.mrf.mxu0  ;;  %v1292_v35 = vpop.f32.mrf.mxu1 }
  0xf1   : > { %v596_v53 = vadd.f32 %v595_v50, %v565_v49  ;;  %v527_v55 = vadd.f32 %v526_v48, %v1596_v51  ;;  %v566_v56 = vmul.f32 %v1596_v51, %v1596_v51  ;;  %v1616_v3 = vadd.f32 %v1276_v52, %v1552_v22 }
  0xf2   : > { %v428_v57 = vpop.f32.mrf.mxu0  ;;  %v492_v48 = vpop.f32.mrf.mxu1  ;;  %v1660_v50 = vadd.f32 %v1552_v22, %v1557_v25 }
  0xf3   : > { %v528_v60 = vadd.f32 %v527_v55, %v1588_v45  ;;  %v597_v61 = vadd.f32 %v596_v53, %v566_v56  ;;  %v1610_v62 = vadd.f32 %v1552_v22, %v428_v57  ;;  %v571_v17 = vmul.f32 %v1616_v3, %v1616_v3 }
  0xf4   : > { %v1277_v63 = vpop.f32.mrf.mxu0  ;;  %v1667_v57 = vadd.f32 %v1552_v22, %v1576_v36  ;;  %v577_v25 = vmul.f32 %v1660_v50, %v1660_v50 }
  0xf5   : > { %v598_v1 = vadd.f32 %v597_v61, %v567_v59  ;;  %v529_v2 = vadd.f32 %v528_v60, %v1599_v54  ;;  %v569_v7 = vmul.f32 %v1610_v62, %v1610_v62  ;;  %v1627_v12 = vadd.f32 %v1277_v63, %v1552_v22  ;;  %v1293_v60 = vpop.f32.mrf.mxu1 }
  0xf6   : > { %v431_v4 = vpop.f32.mrf.mxu0  ;;  %v1672_v61 = vadd.f32 %v1547_v21, %v1552_v22 }
  0xf7   : > { %v530_v6 = vadd.f32 %v529_v2, %v1610_v62  ;;  %v599_v8 = vadd.f32 %v598_v1, %v568_v0  ;;  %v1624_v9 = vadd.f32 %v1552_v22, %v431_v4  ;;  %v572_v26 = vmul.f32 %v1627_v12, %v1627_v12 }
  0xf8   : > { %v1280_v10 = vpop.f32.mrf.mxu0  ;;  %v1679_v1 = vadd.f32 %v1565_v29, %v1552_v22  ;;  %v578_v2 = vmul.f32 %v1667_v57, %v1667_v57  ;;  %v579_v21 = vmul.f32 %v1672_v61, %v1672_v61 }
  0xf9   : > { %v600_v11 = vadd.f32 %v599_v8, %v569_v7  ;;  %v531_v13 = vadd.f32 %v530_v6, %v1624_v9  ;;  %v570_v14 = vmul.f32 %v1624_v9, %v1624_v9  ;;  %v1642_v33 = vadd.f32 %v1280_v10, %v1552_v22  ;;  %v495_v6 = vpop.f32.mrf.mxu1 }
  0xfa   : > { %v444_v15 = vpop.f32.mrf.mxu0  ;;  %v1689_v10 = vadd.f32 %v1552_v22, %v1604_v58  ;;  %v580_v29 = vmul.f32 %v1679_v1, %v1679_v1 }
  0xfb   : > { %v532_v18 = vadd.f32 %v531_v13, %v1616_v3  ;;  %v601_v19 = vadd.f32 %v600_v11, %v570_v14  ;;  %v1636_v20 = vadd.f32 %v1552_v22, %v444_v15  ;;  %v575_v49 = vmul.f32 %v1642_v33, %v1642_v33  ;;  %v1296_v15 = vpop.f32.mrf.mxu1 }
  0xfc   : > { %v1281_v23 = vpop.f32.mrf.mxu0  ;;  %v1695_v14 = vadd.f32 %v1552_v22, %v479_v16  ;;  %v581_v58 = vmul.f32 %v1689_v10, %v1689_v10 }
  0xfd   : > { %v602_v30 = vadd.f32 %v601_v19, %v571_v17  ;;  %v533_v31 = vadd.f32 %v532_v18, %v1627_v12  ;;  %v573_v38 = vmul.f32 %v1636_v20, %v1636_v20  ;;  %v1651_v43 = vadd.f32 %v1281_v23, %v1552_v22 }
  0xfe   : > { %v447_v34 = vpop.f32.mrf.mxu0  ;;  %v1699_v17 = vadd.f32 %v1590_v47, %v1552_v22  ;;  %v582_v16 = vmul.f32 %v1695_v14, %v1695_v14 }
  0xff   : > { %v534_v37 = vadd.f32 %v533_v31, %v1636_v20  ;;  %v603_v39 = vadd.f32 %v602_v30, %v572_v26  ;;  %v1648_v41 = vadd.f32 %v1552_v22, %v447_v34  ;;  %v576_v55 = vmul.f32 %v1651_v43, %v1651_v43  ;;  %v508_v31 = vpop.f32.mrf.mxu1 }
 0x100   : > { %v1706_v26 = vadd.f32 %v1618_v5, %v1552_v22  ;;  %v583_v47 = vmul.f32 %v1699_v17, %v1699_v17 }
 0x101   : > { %v604_v42 = vadd.f32 %v603_v39, %v573_v38  ;;  %v535_v44 = vadd.f32 %v534_v37, %v1648_v41  ;;  %v574_v46 = vmul.f32 %v1648_v41, %v1648_v41  ;;  %v1715_v38 = vadd.f32 %v1552_v22, %v492_v48 }
 0x102   : > { %v584_v39 = vmul.f32 %v1706_v26, %v1706_v26 }
 0x103   : > { %v536_v52 = vadd.f32 %v535_v44, %v1642_v33  ;;  %v605_v53 = vadd.f32 %v604_v42, %v574_v46  ;;  %v1721_v44 = vadd.f32 %v1552_v22, %v495_v6  ;;  %v1297_v46 = vpop.f32.mrf.mxu1 }
 0x105   : > { %v606_v56 = vadd.f32 %v605_v53, %v575_v49  ;;  %v537_v59 = vadd.f32 %v536_v52, %v1651_v43  ;;  %v1724_v49 = vadd.f32 %v1292_v35, %v1552_v22  ;;  %v585_v53 = vmul.f32 %v1715_v38, %v1715_v38 }
 0x107   : > { %v538_v63 = vadd.f32 %v537_v59, %v1660_v50  ;;  %v607_v0 = vadd.f32 %v606_v56, %v576_v55  ;;  %v1730_v56 = vadd.f32 %v1293_v60, %v1552_v22  ;;  %v587_v35 = vmul.f32 %v1724_v49, %v1724_v49 }
 0x109   : > { %v539_v36 = vadd.f32 %v538_v63, %v1667_v57  ;;  %v608_v4 = vadd.f32 %v607_v0, %v577_v25  ;;  %v586_v25 = vmul.f32 %v1721_v44, %v1721_v44  ;;  %v511_v63 = vpop.f32.mrf.mxu1 }
 0x10b   : > { %v540_v7 = vadd.f32 %v539_v36, %v1672_v61  ;;  %v609_v8 = vadd.f32 %v608_v4, %v578_v2  ;;  %v509_v2 = vadd.f32 %v1552_v22, %v508_v31  ;;  %v588_v4 = vmul.f32 %v1730_v56, %v1730_v56 }
 0x10d   : > { %v610_v11 = vadd.f32 %v609_v8, %v579_v21  ;;  %v541_v13 = vadd.f32 %v540_v7, %v1679_v1  ;;  %v512_v21 = vadd.f32 %v1552_v22, %v511_v63  ;;  %v1744_v7 = vadd.f32 %v1296_v15, %v1552_v22 }
 0x10f   : > { %v542_v18 = vadd.f32 %v541_v13, %v1689_v10  ;;  %v611_v19 = vadd.f32 %v610_v11, %v580_v29  ;;  %v589_v29 = vmul.f32 %v509_v2, %v509_v2 }
 0x111   : > { %v612_v23 = vadd.f32 %v611_v19, %v581_v58  ;;  %v543_v30 = vadd.f32 %v542_v18, %v1695_v14  ;;  %v1747_v18 = vadd.f32 %v1297_v46, %v1552_v22  ;;  %v590_v19 = vmul.f32 %v512_v21, %v512_v21 }
 0x113   : > { %v544_v34 = vadd.f32 %v543_v30, %v1699_v17  ;;  %v613_v37 = vadd.f32 %v612_v23, %v582_v16  ;;  %v591_v23 = vmul.f32 %v1744_v7, %v1744_v7  ;;  %v592_v31 = vmul.f32 %v1747_v18, %v1747_v18 }
 0x115   : > { %v614_v5 = vadd.f32 %v613_v37, %v583_v47  ;;  %v545_v42 = vadd.f32 %v544_v34, %v1706_v26 }
 0x117   : > { %v546_v52 = vadd.f32 %v545_v42, %v1715_v38  ;;  %v615_v48 = vadd.f32 %v614_v5, %v584_v39 }
 0x119   : > { %v616_v55 = vadd.f32 %v615_v48, %v585_v53  ;;  %v547_v59 = vadd.f32 %v546_v52, %v1721_v44 }
 0x11b   : > { %v548_v0 = vadd.f32 %v547_v59, %v1724_v49  ;;  %v617_v36 = vadd.f32 %v616_v55, %v586_v25 }
 0x11d   : > { %v618_v6 = vadd.f32 %v617_v36, %v587_v35  ;;  %v549_v60 = vadd.f32 %v548_v0, %v1730_v56 }
 0x11f   : > { %v550_v8 = vadd.f32 %v549_v60, %v509_v2  ;;  %v619_v11 = vadd.f32 %v618_v6, %v588_v4 }
 0x121   : > { %v620_v13 = vadd.f32 %v619_v11, %v589_v29  ;;  %v551_v58 = vadd.f32 %v550_v8, %v512_v21 }
 0x123   : > { %v552_v30 = vadd.f32 %v551_v58, %v1744_v7  ;;  %v621_v16 = vadd.f32 %v620_v13, %v590_v19 }
 0x125   : > { %v553_v15 = vadd.f32 %v552_v30, %v1747_v18  ;;  %v622_v47 = vadd.f32 %v621_v16, %v591_v23 }
 0x127   : > { %v554_v34 = vrot.slane %v553_v15, 4  ;;  %v623_v37 = vadd.f32 %v622_v47, %v592_v31 }
 0x129   : > { %v555_v39 = vadd.f32 %v554_v34, %v553_v15  ;;  %v624_v5 = vrot.slane %v623_v37, 4 }
 0x12b   : > { %v556_v22 = vrot.slane %v555_v39, 2  ;;  %v625_v42 = vadd.f32 %v624_v5, %v623_v37 }
 0x12d   : > { %v557_v46 = vadd.f32 %v556_v22, %v555_v39  ;;  %v626_v52 = vrot.slane %v625_v42, 2 }
 0x12f   : > { %v558_v53 = vrot.slane %v557_v46, 1  ;;  %v627_v48 = vadd.f32 %v626_v52, %v625_v42 }
 0x131   : > { %v559_v55 = vadd.f32 %v558_v53, %v557_v46  ;;  %v628_v59 = vrot.slane %v627_v48, 1 }
 0x133   : > { %v1755_v25 = vmul.f32 0.00390625, %v559_v55  ;;  %v629_v63 = vadd.f32 %v628_v59, %v627_v48 }
 0x135   : > { %v630_v35 = vmul.f32 0.00390625, %v629_v63  ;;  %v631_v0 = vmul.f32 %v1755_v25, %v1755_v25  ;;  %v662_v60 = vsub.f32 %v509_v2, %v1755_v25  ;;  %v663_v8 = vsub.f32 %v512_v21, %v1755_v25 }
 0x136   : > { %v634_v29 = vsub.f32 %v1555_v24, %v1755_v25  ;;  %v635_v11 = vsub.f32 %v1563_v28, %v1755_v25  ;;  %v636_v13 = vsub.f32 %v1560_v27, %v1755_v25  ;;  %v637_v58 = vsub.f32 %v1570_v32, %v1755_v25 }
 0x137   : > { %v632_v36 = vsub.f32 %v630_v35, %v631_v0  ;;  %v638_v19 = vsub.f32 %v1582_v40, %v1755_v25  ;;  %v639_v2 = vsub.f32 %v1596_v51, %v1755_v25  ;;  %v640_v24 = vsub.f32 %v1588_v45, %v1755_v25 }
 0x138   : > { %v641_v28 = vsub.f32 %v1599_v54, %v1755_v25  ;;  %v642_v27 = vsub.f32 %v1610_v62, %v1755_v25  ;;  %v643_v32 = vsub.f32 %v1624_v9, %v1755_v25  ;;  %v644_v40 = vsub.f32 %v1616_v3, %v1755_v25 }
 0x139   : > { %v633_v4 = vmax.f32 %v632_v36, 0.0  ;;  %v645_v51 = vsub.f32 %v1627_v12, %v1755_v25  ;;  %v646_v54 = vsub.f32 %v1636_v20, %v1755_v25  ;;  %v647_v30 = vsub.f32 %v1648_v41, %v1755_v25 }
 0x13a   : > { %v648_v62 = vsub.f32 %v1642_v33, %v1755_v25  ;;  %v649_v3 = vsub.f32 %v1651_v43, %v1755_v25  ;;  %v650_v9 = vsub.f32 %v1660_v50, %v1755_v25  ;;  %v651_v12 = vsub.f32 %v1667_v57, %v1755_v25 }
 0x13b   : > { %v666_v6 = vadd.f32 1e-05, %v633_v4  ;;  %v652_v41 = vsub.f32 %v1672_v61, %v1755_v25  ;;  %v653_v31 = vsub.f32 %v1679_v1, %v1755_v25  ;;  %v654_v33 = vsub.f32 %v1689_v10, %v1755_v25 }
 0x13c   : > { %v655_v43 = vsub.f32 %v1695_v14, %v1755_v25  ;;  %v656_v57 = vsub.f32 %v1699_v17, %v1755_v25  ;;  %v657_v47 = vsub.f32 %v1706_v26, %v1755_v25  ;;  %v658_v61 = vsub.f32 %v1715_v38, %v1755_v25 }
 0x13d   : > { %1364 = vrsqrt.f32 %v666_v6  ;;  %v659_v1 = vsub.f32 %v1721_v44, %v1755_v25  ;;  %v660_v10 = vsub.f32 %v1724_v49, %v1755_v25  ;;  %v661_v14 = vsub.f32 %v1730_v56, %v1755_v25 }
 0x13e   : > { %v664_v37 = vsub.f32 %v1744_v7, %v1755_v25  ;;  %v665_v17 = vsub.f32 %v1747_v18, %v1755_v25 }
 0x14a   : > { %v1778_v21 = vpop.eup %1364 }
 0x14b   : > { %v696_v23 = vmul.f32 %v1778_v21, %v662_v60  ;;  %v697_v45 = vmul.f32 %v1778_v21, %v663_v8  ;;  %v1829_v26 = vmul.f32 %v1778_v21, %v634_v29  ;;  %v1835_v38 = vmul.f32 %v1778_v21, %v635_v11 }
 0x14c   : > { %v1838_v44 = vmul.f32 %v1778_v21, %v636_v13  ;;  %v1841_v49 = vmul.f32 %v1778_v21, %v637_v58  ;;  %v1844_v56 = vmul.f32 %v1778_v21, %v638_v19  ;;  %v1847_v7 = vmul.f32 %v1778_v21, %v639_v2 }
 0x14d   : > { %vm728_vm1 = vcmp.gt.f32.partialorder %v696_v23, 0.0  ;;  %vm729_vm2 = vcmp.gt.f32.partialorder %v697_v45, 0.0  ;;  %v760_v20 = vmul.f32 0.2, %v696_v23  ;;  %v761_v16 = vmul.f32 0.2, %v697_v45 }
 0x14e   : > { %v1850_v18 = vmul.f32 %v1778_v21, %v640_v24  ;;  %v1853_v39 = vmul.f32 %v1778_v21, %v641_v28  ;;  %v1856_v5 = vmul.f32 %v1778_v21, %v642_v27  ;;  %v1859_v22 = vmul.f32 %v1778_v21, %v643_v32 }
 0x14f   : > { %v792_v50 = vsel %vm728_vm1, %v696_v23, %v760_v20  ;;  %v793_v15 = vsel %vm729_vm2, %v697_v45, %v761_v16  ;;  %v1862_v42 = vmul.f32 %v1778_v21, %v644_v40  ;;  %v1865_v46 = vmul.f32 %v1778_v21, %v645_v51 }
 0x150   : > { %v1219_v34 = vpack.c.bf16 %v793_v15, %v792_v50  ;;  %v1868_v52 = vmul.f32 %v1778_v21, %v646_v54  ;;  %v1871_v53 = vmul.f32 %v1778_v21, %v647_v30  ;;  %v1874_v48 = vmul.f32 %v1778_v21, %v648_v62 }
 0x151   : > { %v1877_v55 = vmul.f32 %v1778_v21, %v649_v3  ;;  %v1880_v59 = vmul.f32 %v1778_v21, %v650_v9  ;;  %v1883_v25 = vmul.f32 %v1778_v21, %v651_v12  ;;  %v1886_v63 = vmul.f32 %v1778_v21, %v652_v41 }
 0x152   : > { %1239 = vst [vmem:[%s1831_s17 + $0x70] sm:$0xff] %v1219_v34   ;;  %v1889_v35 = vmul.f32 %v1778_v21, %v653_v31  ;;  %v1892_v0 = vmul.f32 %v1778_v21, %v654_v33  ;;  %v1895_v36 = vmul.f32 %v1778_v21, %v655_v43  ;;  %v1898_v4 = vmul.f32 %v1778_v21, %v656_v57 }
 0x153   : > { %v1901_v6 = vmul.f32 %v1778_v21, %v657_v47  ;;  %v1904_v60 = vmul.f32 %v1778_v21, %v658_v61  ;;  %v1907_v8 = vmul.f32 %v1778_v21, %v659_v1  ;;  %v1910_v29 = vmul.f32 %v1778_v21, %v660_v10 }
 0x154   : > { %v1913_v11 = vmul.f32 %v1778_v21, %v661_v14  ;;  %v1916_v13 = vmul.f32 %v1778_v21, %v664_v37  ;;  %v1919_v58 = vmul.f32 %v1778_v21, %v665_v17  ;;  %vm700_vm3 = vcmp.gt.f32.partialorder %v1829_v26, 0.0 }
 0x155   : > { %vm701_vm4 = vcmp.gt.f32.partialorder %v1835_v38, 0.0  ;;  %vm702_vm5 = vcmp.gt.f32.partialorder %v1838_v44, 0.0  ;;  %vm703_vm6 = vcmp.gt.f32.partialorder %v1841_v49, 0.0  ;;  %vm704_vm7 = vcmp.gt.f32.partialorder %v1844_v56, 0.0 }
 0x156   : > { %vm705_vm8 = vcmp.gt.f32.partialorder %v1847_v7, 0.0  ;;  %vm706_vm9 = vcmp.gt.f32.partialorder %v1850_v18, 0.0  ;;  %vm707_vm10 = vcmp.gt.f32.partialorder %v1853_v39, 0.0  ;;  %vm711_vm14 = vcmp.gt.f32.partialorder %v1865_v46, 0.0 }
 0x157   : > { %v732_v19 = vmul.f32 0.2, %v1829_v26  ;;  %v733_v2 = vmul.f32 0.2, %v1835_v38  ;;  %vm716_vm11 = vcmp.gt.f32.partialorder %v1880_v59, 0.0  ;;  %vm717_vm12 = vcmp.gt.f32.partialorder %v1883_v25, 0.0 }
 0x158   : > { %v734_v24 = vmul.f32 0.2, %v1838_v44  ;;  %v735_v28 = vmul.f32 0.2, %v1841_v49  ;;  %v736_v21 = vmul.f32 0.2, %v1844_v56 }
 0x159   : > { %vm722_vm2 = vcmp.gt.f32.partialorder %v1898_v4, 0.0  ;;  %v737_v27 = vmul.f32 0.2, %v1847_v7  ;;  %v738_v32 = vmul.f32 0.2, %v1850_v18  ;;  %v1955_v51 = vsel %vm700_vm3, %v1829_v26, %v732_v19 }
 0x15a   : > { %v739_v40 = vmul.f32 0.2, %v1853_v39  ;;  %vm725_vm0 = vcmp.gt.f32.partialorder %v1907_v8, 0.0  ;;  %vm726_vm15 = vcmp.gt.f32.partialorder %v1910_v29, 0.0  ;;  %v740_v23 = vmul.f32 0.2, %v1856_v5 }
 0x15b   : > { %v741_v45 = vmul.f32 0.2, %v1859_v22  ;;  %v742_v54 = vmul.f32 0.2, %v1862_v42  ;;  %v765_v30 = vsel %vm701_vm4, %v1835_v38, %v733_v2  ;;  %vm727_vm3 = vcmp.gt.f32.partialorder %v1913_v11, 0.0 }
 0x15c   : > { %vm730_vm13 = vcmp.gt.f32.partialorder %v1916_v13, 0.0  ;;  %vm731_vm1 = vcmp.gt.f32.partialorder %v1919_v58, 0.0  ;;  %v743_v62 = vmul.f32 0.2, %v1865_v46  ;;  %v744_v3 = vmul.f32 0.2, %v1868_v52 }
 0x15d   : > { %v745_v9 = vmul.f32 0.2, %v1871_v53  ;;  %v766_v12 = vsel %vm702_vm5, %v1838_v44, %v734_v24  ;;  %v746_v20 = vmul.f32 0.2, %v1874_v48  ;;  %v747_v16 = vmul.f32 0.2, %v1877_v55 }
 0x15e   : > { %v748_v41 = vmul.f32 0.2, %v1880_v59  ;;  %v767_v31 = vsel %vm703_vm6, %v1841_v49, %v735_v28  ;;  %v749_v33 = vmul.f32 0.2, %v1883_v25  ;;  %v750_v43 = vmul.f32 0.2, %v1886_v63 }
 0x15f   : > { %v751_v50 = vmul.f32 0.2, %v1889_v35  ;;  %v768_v15 = vsel %vm704_vm7, %v1844_v56, %v736_v21  ;;  %v752_v57 = vmul.f32 0.2, %v1892_v0  ;;  %v753_v47 = vmul.f32 0.2, %v1895_v36 }
 0x160   : > { %v754_v34 = vmul.f32 0.2, %v1898_v4  ;;  %v769_v61 = vsel %vm705_vm8, %v1847_v7, %v737_v27  ;;  %v755_v1 = vmul.f32 0.2, %v1901_v6  ;;  %v756_v10 = vmul.f32 0.2, %v1904_v60 }
 0x161   : > { %v757_v14 = vmul.f32 0.2, %v1907_v8  ;;  %v770_v37 = vsel %vm706_vm9, %v1850_v18, %v738_v32  ;;  %v758_v17 = vmul.f32 0.2, %v1910_v29  ;;  %v759_v26 = vmul.f32 0.2, %v1913_v11 }
 0x162   : > { %v762_v38 = vmul.f32 0.2, %v1916_v13  ;;  %v771_v44 = vsel %vm707_vm10, %v1853_v39, %v739_v40  ;;  %v763_v49 = vmul.f32 0.2, %v1919_v58  ;;  %vm2146_vm4 = vcmp.gt.f32.partialorder %v1856_v5, 0.0 }
 0x163   : > { %v772_v56 = vsel %vm2146_vm4, %v1856_v5, %v740_v23  ;;  %vm2147_vm5 = vcmp.gt.f32.partialorder %v1859_v22, 0.0  ;;  %vm2148_vm6 = vcmp.gt.f32.partialorder %v1862_v42, 0.0  ;;  %v775_v19 = vsel %vm711_vm14, %v1865_v46, %v743_v62 }
 0x164   : > { %v773_v7 = vsel %vm2147_vm5, %v1859_v22, %v741_v45  ;;  %v774_v18 = vsel %vm2148_vm6, %v1862_v42, %v742_v54  ;;  %vm2149_vm7 = vcmp.gt.f32.partialorder %v1868_v52, 0.0  ;;  %vm2150_vm8 = vcmp.gt.f32.partialorder %v1871_v53, 0.0 }
 0x165   : > { %v776_v39 = vsel %vm2149_vm7, %v1868_v52, %v744_v3  ;;  %v777_v5 = vsel %vm2150_vm8, %v1871_v53, %v745_v9  ;;  %vm2151_vm9 = vcmp.gt.f32.partialorder %v1874_v48, 0.0  ;;  %vm2152_vm10 = vcmp.gt.f32.partialorder %v1877_v55, 0.0 }
 0x166   : > { %v778_v22 = vsel %vm2151_vm9, %v1874_v48, %v746_v20  ;;  %v779_v42 = vsel %vm2152_vm10, %v1877_v55, %v747_v16  ;;  %v780_v46 = vsel %vm716_vm11, %v1880_v59, %v748_v41  ;;  %v781_v52 = vsel %vm717_vm12, %v1883_v25, %v749_v33 }
 0x167   : > { %vm2153_vm14 = vcmp.gt.f32.partialorder %v1886_v63, 0.0  ;;  %vm2154_vm4 = vcmp.gt.f32.partialorder %v1889_v35, 0.0  ;;  %vm2155_vm5 = vcmp.gt.f32.partialorder %v1892_v0, 0.0  ;;  %vm2156_vm11 = vcmp.gt.f32.partialorder %v1895_v36, 0.0 }
 0x168   : > { %v782_v53 = vsel %vm2153_vm14, %v1886_v63, %v750_v43  ;;  %v783_v48 = vsel %vm2154_vm4, %v1889_v35, %v751_v50  ;;  %v784_v55 = vsel %vm2155_vm5, %v1892_v0, %v752_v57  ;;  %v785_v59 = vsel %vm2156_vm11, %v1895_v36, %v753_v47 }
 0x169   : > { %v786_v25 = vsel %vm722_vm2, %v1898_v4, %v754_v34  ;;  %vm2157_vm12 = vcmp.gt.f32.partialorder %v1901_v6, 0.0  ;;  %vm2158_vm6 = vcmp.gt.f32.partialorder %v1904_v60, 0.0  ;;  %v789_v0 = vsel %vm725_vm0, %v1907_v8, %v757_v14 }
 0x16a   : > { %v787_v63 = vsel %vm2157_vm12, %v1901_v6, %v755_v1  ;;  %v788_v35 = vsel %vm2158_vm6, %v1904_v60, %v756_v10  ;;  %v790_v36 = vsel %vm726_vm15, %v1910_v29, %v758_v17  ;;  %v791_v4 = vsel %vm727_vm3, %v1913_v11, %v759_v26 }
 0x16b   : > { %v794_v6 = vsel %vm730_vm13, %v1916_v13, %v762_v38  ;;  %v795_v60 = vsel %vm731_vm1, %v1919_v58, %v763_v49  ;;  %v1149_v8 = vpack.c.bf16 %v765_v30, %v1955_v51  ;;  %v1154_v29 = vpack.c.bf16 %v767_v31, %v766_v12 }
 0x16c   : > { %v1159_v2 = vpack.c.bf16 %v769_v61, %v768_v15  ;;  %v1164_v24 = vpack.c.bf16 %v771_v44, %v770_v37  ;;  %v1169_v28 = vpack.c.bf16 %v773_v7, %v772_v56  ;;  %v1174_v11 = vpack.c.bf16 %v775_v19, %v774_v18 }
 0x16d   : > { %1150 = vst [vmem:[%s1831_s17] sm:$0xff] %v1149_v8   ;;  %v1179_v13 = vpack.c.bf16 %v777_v5, %v776_v39  ;;  %v1184_v21 = vpack.c.bf16 %v779_v42, %v778_v22  ;;  %v1189_v27 = vpack.c.bf16 %v781_v52, %v780_v46  ;;  %1226 = vst [vmem:[%s1831_s17 + $0x8] sm:$0xff] %v1154_v29  }
 0x16e   : > { %1227 = vst [vmem:[%s1831_s17 + $0x10] sm:$0xff] %v1159_v2   ;;  %1228 = vst [vmem:[%s1831_s17 + $0x18] sm:$0xff] %v1164_v24   ;;  %v1194_v58 = vpack.c.bf16 %v783_v48, %v782_v53  ;;  %v1199_v32 = vpack.c.bf16 %v785_v59, %v784_v55  ;;  %v1204_v40 = vpack.c.bf16 %v787_v63, %v786_v25 }
 0x16f   : > { %1229 = vst [vmem:[%s1831_s17 + $0x20] sm:$0xff] %v1169_v28   ;;  %v1209_v51 = vpack.c.bf16 %v789_v0, %v788_v35  ;;  %1230 = vst [vmem:[%s1831_s17 + $0x28] sm:$0xff] %v1174_v11   ;;  %v1214_v23 = vpack.c.bf16 %v791_v4, %v790_v36  ;;  %v1224_v45 = vpack.c.bf16 %v795_v60, %v794_v6 }
 0x170   : > { %1231 = vst [vmem:[%s1831_s17 + $0x30] sm:$0xff] %v1179_v13   ;;  %1232 = vst [vmem:[%s1831_s17 + $0x38] sm:$0xff] %v1184_v21  }
 0x171   : > { %1233 = vst [vmem:[%s1831_s17 + $0x40] sm:$0xff] %v1189_v27   ;;  %1234 = vst [vmem:[%s1831_s17 + $0x48] sm:$0xff] %v1194_v58  }
 0x172   : > { %1235 = vst [vmem:[%s1831_s17 + $0x50] sm:$0xff] %v1199_v32   ;;  %1236 = vst [vmem:[%s1831_s17 + $0x58] sm:$0xff] %v1204_v40  }
 0x173   : > { %1237 = vst [vmem:[%s1831_s17 + $0x60] sm:$0xff] %v1209_v51   ;;  %1238 = vst [vmem:[%s1831_s17 + $0x68] sm:$0xff] %v1214_v23  }
 0x174   : > { %1240 = vst [vmem:[%s1831_s17 + $0x78] sm:$0xff] %v1224_v45  }
 0x175   : > { %1379 = shalt.err (!%p1376_p3)
}
 0x176   : > { %s1380_s4 = scalar_lea.hbm %s2084_s25, 2048  ;;  %s1384_s7 = scalar_lea.hbm %s2143_s3, 4096 }
 0x177   : > { %p1381_p4 = scmp.ne.s32.totalorder %s2084_s25, %s1380_s4  ;;  %p1385_p9 = scmp.lt.s32.totalorder %s2084_s25, %s2143_s3 }
 0x178   : > { %p1386_p10 = scmp.lt.s32.totalorder %s1384_s7, %s1380_s4 }
 0x179   : > { %p1382_p7 = pnand %p1381_p4, %p1489_p5 }
 0x17a   : > { %p1387_p11 = por %p1386_p10, %p1385_p9 }
 0x17b   : > { %p1383_p8 = pneg %p1382_p7 }
 0x17d   : > { %p1388_p12 = pnand %p1387_p11, %p1383_p8 }
 0x17f   : > { %1391 = shalt.err (!%p1388_p12)
}
 0x180   : > { %s1429_s10 = smov 64   ;;  %s1430_s11 = smov 4  }
 0x181   : > { %1304 = dma.vmem_to_hbm [thread:$0]  (%p1489_p5), %s2086_s20, 2048, %s2084_s25, %s2100_s26, %s1429_s10, %s1429_s10, %s1430_s11  }
 0x182 PF: > { %p1310_p13 = scmp.ge.s32.totalorder %s1426_s15, 2  ;;  %s985_s17 = sand.u32 1, %s1414_s12  }
 0x183   : > { %s986_s19 = scalar_lea.sflag [#allocation3], %s985_s17 }
 0x184   : > { %p1307_p0 = pnand %p1310_p13, %p1493_p6 }
 0x186   : > { %p1308_p1 = pneg %p1307_p0 }
 0x188   : > { %1409 = dma.done.wait (%p1308_p1), %s986_s19, 2048  }
 0x189   : > { %1411 = vsyncadd (%p1308_p1), %s986_s19, 4294965248  ;;  %p13_p2 = scmp.ge.s32.totalorder %s1476_s18, 4   ;;  %s2159_s12 = smov %s1418_s13 }
 0x18a   : > { %s2160_s13 = smov %s1422_s14  ;;  %s2161_s14 = smov %s1487_s21 }
 0x18b   : > { %s2162_s15 = smov %s1476_s18  ;;  %15 = sbr.rel (!%p13_p2) target bundleno = 3 (0x3), region = 67 }
 0x190   :  { %991 = vsyncpa [#allocation3], 1 }
 0x191   :  { %993 = vsyncpa [#allocation3 + $0x1], 1 }

</bundles_post_ra>
